<compile_context>
chip_gen: v5e
topology: v5e:2x2
jax: 0.10.0
libtpu: 0.0.40
codegen_flags: <defaults>
</compile_context>

<pallas_src>
import functools

import jax
import jax.numpy as jnp
from jax.experimental import pallas as pl
from jax.experimental.pallas import tpu as pltpu

_LANE = 128
_PSI_MXU_MIN_FINT = 64                    # below this, psi projection runs on VPU/XLU
_VMEM_DATA_BUDGET = 36 * 1024 * 1024      # conservative, safe on v5e/v6e/v7x
_VMEM_LIMIT_BYTES = 48 * 1024 * 1024      # < v7x physical 64 MiB, leaves compiler headroom


# ----------------------------------------------------------------------------
# Pallas kernel: channels on sublanes, spatial on lanes.
# ----------------------------------------------------------------------------
def _attention_gate_kernel(g_ref, x_ref, wg_ref, wx_ref, b_ref, wp_ref, bp_ref,
                           o_ref, *, nb, psi_on_mxu):
    # g_ref: (nb, F_g, tm)   x_ref: (nb, F_l, tm)   o_ref: (nb, F_l, tm)
    # wg_ref: (F_int, F_g)   wx_ref: (F_int, F_l)   (activation dtype)
    # b_ref:  (F_int, 1) f32 (pre-summed bg + bx)
    # wp_ref: (1, F_int) f32 if psi_on_mxu else (F_int, 1) f32
    # bp_ref: (1, 1) f32
    wg = wg_ref[...]
    wx = wx_ref[...]
    b = b_ref[...]
    wp = wp_ref[...]
    bp = bp_ref[...]

    for n in range(nb):                               # static unroll over the batch block
        g_blk = g_ref[n]                              # (F_g, tm), activation dtype -> MXU
        x_blk = x_ref[n]                              # (F_l, tm)

        a = jnp.dot(wg, g_blk, preferred_element_type=jnp.float32)
        a = a + jnp.dot(wx, x_blk, preferred_element_type=jnp.float32)
        a = jnp.maximum(a + b, 0.0)                   # (F_int, tm), f32

        if psi_on_mxu:
            z = jnp.dot(wp, a, preferred_element_type=jnp.float32) + bp    # (1, tm)
        else:
            # Small F_int: VPU multiply + cross-sublane (XLU) reduce beats a
            # 1xF_int MXU matmul (avoids the weight-push + result-pop per step).
            z = jnp.sum(a * wp, axis=0, keepdims=True) + bp                # (1, tm)

        psi = 1.0 / (1.0 + jnp.exp(-z))               # exact sigmoid, f32 (EUP exp)
        # Gate in f32 (safe on v5e: no bf16 VPU), cast once on the store.
        o_ref[n] = (x_blk.astype(jnp.float32) * psi).astype(o_ref.dtype)


# ----------------------------------------------------------------------------
# Helpers
# ----------------------------------------------------------------------------
def _round_up(a, b):
    return (a + b - 1) // b * b


def _fold_bn(weight, bias, gamma, beta, mean, var, eps=1e-5):
    """Fold eval-mode BatchNorm into a preceding 1x1 conv (weight: (Cin, Cout))."""
    scale = gamma / jnp.sqrt(var + eps)               # (Cout,)
    return weight * scale[None, :], (bias - mean) * scale + beta


def fold_attention_params(params, eps=1e-5):
    """Fold BN into the 1x1 convs ONCE (hoisted out of the jitted forward)."""
    wg, bg = _fold_bn(params["wg"], params["bg"], params["gamma_g"],
                      params["beta_g"], params["mean_g"], params["var_g"], eps)
    wx, bx = _fold_bn(params["wx"], params["bx"], params["gamma_x"],
                      params["beta_x"], params["mean_x"], params["var_x"], eps)
    wp, bp = _fold_bn(params["wp"], params["bp"], params["gamma_p"],
                      params["beta_p"], params["mean_p"], params["var_p"], eps)
    return {
        "wg_t": wg.T,                                            # (F_int, F_g), f32 master copy
        "wx_t": wx.T,                                            # (F_int, F_l)
        "b_gx": (bg + bx).reshape(-1, 1).astype(jnp.float32),    # pre-summed bias (F_int, 1)
        "wp": wp.reshape(-1).astype(jnp.float32),                # (F_int,)
        "bp": bp.reshape(1, 1).astype(jnp.float32),              # (1, 1)
    }


def _choose_tiling(N, F_g, F_l, F_int, S, act_bytes, out_bytes, max_tm):
    """Largest lane-dense spatial tile (and batch block) fitting a VMEM data budget."""
    max_tm = max(int(max_tm), _LANE)
    cands = []
    t = _LANE
    while t <= min(max_tm, S):
        cands.append(t)
        t *= 2
    if not cands:
        cands = [S]            # S < 128: a full-extent last dim is still a legal block
    cands.sort(reverse=True)

    def vmem_est(nb, tm):
        tiles = 2 * nb * tm * ((F_g + F_l) * act_bytes + F_l * out_bytes)   # dbl-buffered g/x/out
        weights = 2 * (F_int * (F_g + F_l) * act_bytes + (F_int + 2) * 4)
        scratch = 2 * (F_int + 8) * tm * 4                                  # f32 intermediates
        return tiles + weights + scratch

    for tm in cands:
        for nb in ((N, 1) if N > 1 else (1,)):
            if vmem_est(nb, tm) <= _VMEM_DATA_BUDGET:
                return tm, nb
    return cands[-1], 1


# ----------------------------------------------------------------------------
# Wrapper
# ----------------------------------------------------------------------------
@functools.partial(jax.jit, static_argnames=("max_tm",))
def attention_gate(g, x, folded, max_tm=2048):
    """g: (N, F_g, H, W), x: (N, F_l, H, W) -> (N, F_l, H, W) in x.dtype."""
    N, F_g, H, W = g.shape
    _, F_l, _, _ = x.shape
    S = H * W
    F_int = folded["wg_t"].shape[0]

    # Matmul weights in the activation dtype (tiny cast; activations stream untouched).
    wg_t = folded["wg_t"].astype(g.dtype)
    wx_t = folded["wx_t"].astype(x.dtype)
    b_gx = folded["b_gx"]
    bp = folded["bp"]

    psi_on_mxu = F_int >= _PSI_MXU_MIN_FINT
    wp_arr = folded["wp"].reshape((1, F_int) if psi_on_mxu else (F_int, 1))

    # NCHW -> (N, C, S): free reshape; channels on sublanes, spatial on lanes.
    g3 = g.reshape(N, F_g, S)
    x3 = x.reshape(N, F_l, S)

    act_bytes = jnp.dtype(g.dtype).itemsize
    out_bytes = jnp.dtype(x.dtype).itemsize
    tm, nb = _choose_tiling(N, F_g, F_l, F_int, S, act_bytes, out_bytes, max_tm)
    grid = (N // nb, pl.cdiv(S, tm))     # ragged trailing spatial block: no pad, no slice

    kernel = functools.partial(_attention_gate_kernel, nb=nb, psi_on_mxu=psi_on_mxu)

    out = pl.pallas_call(
        kernel,
        out_shape=jax.ShapeDtypeStruct((N, F_l, S), x.dtype),
        grid_spec=pltpu.PrefetchScalarGridSpec(
            num_scalar_prefetch=0,
            grid=grid,
            in_specs=[
                pl.BlockSpec((nb, F_g, tm), lambda b, s: (b, 0, s)),   # g tile
                pl.BlockSpec((nb, F_l, tm), lambda b, s: (b, 0, s)),   # x tile
                pl.BlockSpec((F_int, F_g), lambda b, s: (0, 0)),       # W_g^T (BN-folded)
                pl.BlockSpec((F_int, F_l), lambda b, s: (0, 0)),       # W_x^T (BN-folded)
                pl.BlockSpec((F_int, 1), lambda b, s: (0, 0)),         # bg + bx
                pl.BlockSpec(wp_arr.shape, lambda b, s: (0, 0)),       # W_psi (folded)
                pl.BlockSpec((1, 1), lambda b, s: (0, 0)),             # b_psi
            ],
            out_specs=pl.BlockSpec((nb, F_l, tm), lambda b, s: (b, 0, s)),
        ),
        compiler_params=pltpu.CompilerParams(
            dimension_semantics=("parallel", "parallel"),
            vmem_limit_bytes=_VMEM_LIMIT_BYTES,
        ),
    )(g3, x3, wg_t, wx_t, b_gx, wp_arr, bp)

    return out.reshape(N, F_l, H, W)


# ----------------------------------------------------------------------------
# Pure-JAX reference (un-fused: conv + explicit eval-mode BN) for correctness.
# ----------------------------------------------------------------------------
def attention_block_ref(g, x, params, eps=1e-5):
    def conv_bn(t, w, b, gamma, beta, mean, var):
        y = t @ w + b                                          # 1x1 conv as channel matmul
        return (y - mean) / jnp.sqrt(var + eps) * gamma + beta
    g_nhwc = jnp.transpose(g, (0, 2, 3, 1)).astype(jnp.float32)
    x_nhwc = jnp.transpose(x, (0, 2, 3, 1)).astype(jnp.float32)
    g1 = conv_bn(g_nhwc, params["wg"], params["bg"], params["gamma_g"],
                 params["beta_g"], params["mean_g"], params["var_g"])
    x1 = conv_bn(x_nhwc, params["wx"], params["bx"], params["gamma_x"],
                 params["beta_x"], params["mean_x"], params["var_x"])
    a = jnp.maximum(g1 + x1, 0.0)
    z = conv_bn(a, params["wp"], params["bp"], params["gamma_p"],
                params["beta_p"], params["mean_p"], params["var_p"])
    psi = jax.nn.sigmoid(z)
    return jnp.transpose(x_nhwc * psi, (0, 3, 1, 2))


# ----------------------------------------------------------------------------
# Deterministic parameter init (shapes from AttentionBlock.__init__),
# with non-trivial eval-mode BN stats so the folding path is actually exercised.
# ----------------------------------------------------------------------------
def init_params(key, F_g, F_l, F_int):
    ks = jax.random.split(key, 12)
    return {
        # Conv weights stored as (Cin, Cout) since kernel_size=1.
        "wg": jax.random.normal(ks[0], (F_g, F_int), jnp.float32) * 0.1,
        "bg": jax.random.normal(ks[1], (F_int,), jnp.float32) * 0.1,
        "wx": jax.random.normal(ks[2], (F_l, F_int), jnp.float32) * 0.1,
        "bx": jax.random.normal(ks[3], (F_int,), jnp.float32) * 0.1,
        "wp": jax.random.normal(ks[4], (F_int, 1), jnp.float32) * 0.1,
        "bp": jax.random.normal(ks[5], (1,), jnp.float32) * 0.1,
        "gamma_g": 1.0 + 0.1 * jax.random.normal(ks[6], (F_int,), jnp.float32),
        "beta_g": 0.1 * jax.random.normal(ks[7], (F_int,), jnp.float32),
        "mean_g": 0.1 * jax.random.normal(ks[8], (F_int,), jnp.float32),
        "var_g": 0.5 + jax.random.uniform(ks[9], (F_int,), jnp.float32),
        "gamma_x": 1.0 + 0.1 * jax.random.normal(ks[10], (F_int,), jnp.float32),
        "beta_x": 0.1 * jax.random.normal(ks[11], (F_int,), jnp.float32),
        "mean_x": jnp.linspace(-0.1, 0.1, F_int, dtype=jnp.float32),
        "var_x": jnp.linspace(0.8, 1.2, F_int, dtype=jnp.float32),
        "gamma_p": jnp.array([1.1], jnp.float32),
        "beta_p": jnp.array([0.05], jnp.float32),
        "mean_p": jnp.array([0.02], jnp.float32),
        "var_p": jnp.array([0.9], jnp.float32),
    }


if __name__ == "__main__":
    N, F_g, F_l, F_int, H, W = 2, 4, 4, 8, 16, 16

    key = jax.random.PRNGKey(0)
    kg, kx, kp = jax.random.split(key, 3)
    params = init_params(kp, F_g, F_l, F_int)
    folded = fold_attention_params(params)        # BN folded once, outside the jitted forward

    # --- bf16 activation streams (deployment path: halved HBM traffic) ---
    g32 = jax.random.normal(kg, (N, F_g, H, W), jnp.float32)
    x32 = jax.random.normal(kx, (N, F_l, H, W), jnp.float32)
    g_bf = g32.astype(jnp.bfloat16)
    x_bf = x32.astype(jnp.bfloat16)
    out_bf = jax.block_until_ready(attention_gate(g_bf, x_bf, folded))
    ref_bf = attention_block_ref(g_bf, x_bf, params)
    assert out_bf.shape == (N, F_l, H, W) and out_bf.dtype == jnp.bfloat16
    assert jnp.allclose(out_bf.astype(jnp.float32), ref_bf, atol=3e-2, rtol=3e-2), \
        "bf16 path mismatch vs reference"

    # --- f32 path with a ragged spatial tile (S not a multiple of the tile) ---
    H2, W2 = 18, 18                                # S = 324 -> trailing partial block
    g2 = jax.random.normal(jax.random.fold_in(key, 1), (N, F_g, H2, W2), jnp.float32)
    x2 = jax.random.normal(jax.random.fold_in(key, 2), (N, F_l, H2, W2), jnp.float32)
    out2 = jax.block_until_ready(attention_gate(g2, x2, folded, max_tm=128))
    ref2 = attention_block_ref(g2, x2, params)
    assert out2.shape == (N, F_l, H2, W2)
    assert jnp.allclose(out2, ref2, atol=2e-3, rtol=2e-3), "f32 ragged path mismatch vs reference"

    print("KERNEL_OK")
</pallas_src>

<mosaic_0001>
module attributes {stable_mosaic.version = 11 : i64} {
  func.func @_attention_gate_kernel(%arg0: i32, %arg1: i32, %arg2: memref<2x4x256xbf16, #tpu.memory_space<vmem>>, %arg3: memref<2x4x256xbf16, #tpu.memory_space<vmem>>, %arg4: memref<8x4xbf16, #tpu.memory_space<vmem>>, %arg5: memref<8x4xbf16, #tpu.memory_space<vmem>>, %arg6: memref<8x1xf32, #tpu.memory_space<vmem>>, %arg7: memref<8x1xf32, #tpu.memory_space<vmem>>, %arg8: memref<1x1xf32, #tpu.memory_space<vmem>>, %arg9: memref<2x4x256xbf16, #tpu.memory_space<vmem>>) attributes {dimension_semantics = [#tpu.dimension_semantics<parallel>, #tpu.dimension_semantics<parallel>], iteration_bounds = array<i64: 1, 1>, scalar_prefetch = 0 : i64, scratch_operands = 0 : i64, tpu.core_type = #tpu.core_type<tc>, window_params = [{transform_indices = @transform_0, window_bounds = array<i64: 2, 4, 256>}, {transform_indices = @transform_1, window_bounds = array<i64: 2, 4, 256>}, {pipeline_mode = #tpu.pipeline_mode<synchronous>, transform_indices = @transform_2, window_bounds = array<i64: 8, 4>}, {pipeline_mode = #tpu.pipeline_mode<synchronous>, transform_indices = @transform_3, window_bounds = array<i64: 8, 4>}, {pipeline_mode = #tpu.pipeline_mode<synchronous>, transform_indices = @transform_4, window_bounds = array<i64: 8, 1>}, {pipeline_mode = #tpu.pipeline_mode<synchronous>, transform_indices = @transform_5, window_bounds = array<i64: 8, 1>}, {pipeline_mode = #tpu.pipeline_mode<synchronous>, transform_indices = @transform_6, window_bounds = array<i64: 1, 1>}, {transform_indices = @transform_7, window_bounds = array<i64: 2, 4, 256>}]} {
    %c0 = arith.constant 0 : index
    %c0_0 = arith.constant 0 : index
    %0 = vector.load %arg4[%c0, %c0_0] : memref<8x4xbf16, #tpu.memory_space<vmem>>, vector<8x4xbf16>
    %c0_1 = arith.constant 0 : index
    %c0_2 = arith.constant 0 : index
    %1 = vector.load %arg5[%c0_1, %c0_2] : memref<8x4xbf16, #tpu.memory_space<vmem>>, vector<8x4xbf16>
    %c0_3 = arith.constant 0 : index
    %c0_4 = arith.constant 0 : index
    %2 = vector.load %arg6[%c0_3, %c0_4] : memref<8x1xf32, #tpu.memory_space<vmem>>, vector<8x1xf32>
    %c0_5 = arith.constant 0 : index
    %c0_6 = arith.constant 0 : index
    %3 = vector.load %arg7[%c0_5, %c0_6] : memref<8x1xf32, #tpu.memory_space<vmem>>, vector<8x1xf32>
    %c0_7 = arith.constant 0 : index
    %c0_8 = arith.constant 0 : index
    %4 = vector.load %arg8[%c0_7, %c0_8] : memref<1x1xf32, #tpu.memory_space<vmem>>, vector<1x1xf32>
    %c0_9 = arith.constant 0 : index
    %c0_10 = arith.constant 0 : index
    %c0_11 = arith.constant 0 : index
    %5 = vector.load %arg2[%c0_9, %c0_10, %c0_11] : memref<2x4x256xbf16, #tpu.memory_space<vmem>>, vector<1x4x256xbf16>
    %6 = vector.shape_cast %5 : vector<1x4x256xbf16> to vector<4x256xbf16>
    %c0_12 = arith.constant 0 : index
    %c0_13 = arith.constant 0 : index
    %c0_14 = arith.constant 0 : index
    %7 = vector.load %arg3[%c0_12, %c0_13, %c0_14] : memref<2x4x256xbf16, #tpu.memory_space<vmem>>, vector<1x4x256xbf16>
    %8 = vector.shape_cast %7 : vector<1x4x256xbf16> to vector<4x256xbf16>
    %cst = arith.constant dense<0.000000e+00> : vector<8x256xf32>
    %9 = tpu.matmul %0, %6, %cst {dimension_numbers = #tpu.dot_dimension_numbers<[1], [0], [0], [1], [0, 0, 1, 1], [], []>} : vector<8x4xbf16>, vector<4x256xbf16>, vector<8x256xf32> -> vector<8x256xf32>
    %cst_15 = arith.constant dense<0.000000e+00> : vector<8x256xf32>
    %10 = tpu.matmul %1, %8, %cst_15 {dimension_numbers = #tpu.dot_dimension_numbers<[1], [0], [0], [1], [0, 0, 1, 1], [], []>} : vector<8x4xbf16>, vector<4x256xbf16>, vector<8x256xf32> -> vector<8x256xf32>
    %11 = arith.addf %9, %10 : vector<8x256xf32>
    %12 = vector.broadcast %2 : vector<8x1xf32> to vector<8x256xf32>
    %13 = arith.addf %11, %12 : vector<8x256xf32>
    %cst_16 = arith.constant 0.000000e+00 : f32
    %14 = vector.broadcast %cst_16 : f32 to vector<8x256xf32>
    %15 = arith.maximumf %13, %14 : vector<8x256xf32>
    %16 = vector.broadcast %3 : vector<8x1xf32> to vector<8x256xf32>
    %17 = arith.mulf %15, %16 : vector<8x256xf32>
    %cst_17 = arith.constant dense<0.000000e+00> : vector<256xf32>
    %18 = vector.multi_reduction <add>, %17, %cst_17 [0] : vector<8x256xf32> to vector<256xf32>
    %19 = vector.shape_cast %18 : vector<256xf32> to vector<1x256xf32>
    %20 = vector.broadcast %4 : vector<1x1xf32> to vector<1x256xf32>
    %21 = arith.addf %19, %20 : vector<1x256xf32>
    %cst_18 = arith.constant 0.000000e+00 : f32
    %22 = vector.broadcast %cst_18 : f32 to vector<1x256xf32>
    %23 = arith.subf %22, %21 : vector<1x256xf32>
    %24 = math.exp %23 : vector<1x256xf32>
    %cst_19 = arith.constant 1.000000e+00 : f32
    %25 = vector.broadcast %cst_19 : f32 to vector<1x256xf32>
    %26 = arith.addf %25, %24 : vector<1x256xf32>
    %cst_20 = arith.constant 1.000000e+00 : f32
    %27 = vector.broadcast %cst_20 : f32 to vector<1x256xf32>
    %28 = arith.divf %27, %26 : vector<1x256xf32>
    %29 = arith.extf %8 : vector<4x256xbf16> to vector<4x256xf32>
    %30 = vector.broadcast %28 : vector<1x256xf32> to vector<4x256xf32>
    %31 = arith.mulf %29, %30 : vector<4x256xf32>
    %32 = arith.truncf %31 : vector<4x256xf32> to vector<4x256xbf16>
    %c0_21 = arith.constant 0 : index
    %c0_22 = arith.constant 0 : index
    %c0_23 = arith.constant 0 : index
    %33 = vector.load %arg9[%c0_21, %c0_22, %c0_23] : memref<2x4x256xbf16, #tpu.memory_space<vmem>>, vector<1x4x256xbf16>
    %34 = vector.shape_cast %33 : vector<1x4x256xbf16> to vector<4x256xbf16>
    %35 = vector.shape_cast %32 : vector<4x256xbf16> to vector<1x4x256xbf16>
    tpu.vector_store %arg9[%c0_21, %c0_22, %c0_23], %35 {strides = array<i32>} : memref<2x4x256xbf16, #tpu.memory_space<vmem>>, vector<1x4x256xbf16>,
    %c1 = arith.constant 1 : index
    %c0_24 = arith.constant 0 : index
    %c0_25 = arith.constant 0 : index
    %36 = vector.load %arg2[%c1, %c0_24, %c0_25] : memref<2x4x256xbf16, #tpu.memory_space<vmem>>, vector<1x4x256xbf16>
    %37 = vector.shape_cast %36 : vector<1x4x256xbf16> to vector<4x256xbf16>
    %c1_26 = arith.constant 1 : index
    %c0_27 = arith.constant 0 : index
    %c0_28 = arith.constant 0 : index
    %38 = vector.load %arg3[%c1_26, %c0_27, %c0_28] : memref<2x4x256xbf16, #tpu.memory_space<vmem>>, vector<1x4x256xbf16>
    %39 = vector.shape_cast %38 : vector<1x4x256xbf16> to vector<4x256xbf16>
    %cst_29 = arith.constant dense<0.000000e+00> : vector<8x256xf32>
    %40 = tpu.matmul %0, %37, %cst_29 {dimension_numbers = #tpu.dot_dimension_numbers<[1], [0], [0], [1], [0, 0, 1, 1], [], []>} : vector<8x4xbf16>, vector<4x256xbf16>, vector<8x256xf32> -> vector<8x256xf32>
    %cst_30 = arith.constant dense<0.000000e+00> : vector<8x256xf32>
    %41 = tpu.matmul %1, %39, %cst_30 {dimension_numbers = #tpu.dot_dimension_numbers<[1], [0], [0], [1], [0, 0, 1, 1], [], []>} : vector<8x4xbf16>, vector<4x256xbf16>, vector<8x256xf32> -> vector<8x256xf32>
    %42 = arith.addf %40, %41 : vector<8x256xf32>
    %43 = vector.broadcast %2 : vector<8x1xf32> to vector<8x256xf32>
    %44 = arith.addf %42, %43 : vector<8x256xf32>
    %cst_31 = arith.constant 0.000000e+00 : f32
    %45 = vector.broadcast %cst_31 : f32 to vector<8x256xf32>
    %46 = arith.maximumf %44, %45 : vector<8x256xf32>
    %47 = vector.broadcast %3 : vector<8x1xf32> to vector<8x256xf32>
    %48 = arith.mulf %46, %47 : vector<8x256xf32>
    %cst_32 = arith.constant dense<0.000000e+00> : vector<256xf32>
    %49 = vector.multi_reduction <add>, %48, %cst_32 [0] : vector<8x256xf32> to vector<256xf32>
    %50 = vector.shape_cast %49 : vector<256xf32> to vector<1x256xf32>
    %51 = vector.broadcast %4 : vector<1x1xf32> to vector<1x256xf32>
    %52 = arith.addf %50, %51 : vector<1x256xf32>
    %cst_33 = arith.constant 0.000000e+00 : f32
    %53 = vector.broadcast %cst_33 : f32 to vector<1x256xf32>
    %54 = arith.subf %53, %52 : vector<1x256xf32>
    %55 = math.exp %54 : vector<1x256xf32>
    %cst_34 = arith.constant 1.000000e+00 : f32
    %56 = vector.broadcast %cst_34 : f32 to vector<1x256xf32>
    %57 = arith.addf %56, %55 : vector<1x256xf32>
    %cst_35 = arith.constant 1.000000e+00 : f32
    %58 = vector.broadcast %cst_35 : f32 to vector<1x256xf32>
    %59 = arith.divf %58, %57 : vector<1x256xf32>
    %60 = arith.extf %39 : vector<4x256xbf16> to vector<4x256xf32>
    %61 = vector.broadcast %59 : vector<1x256xf32> to vector<4x256xf32>
    %62 = arith.mulf %60, %61 : vector<4x256xf32>
    %63 = arith.truncf %62 : vector<4x256xf32> to vector<4x256xbf16>
    %c1_36 = arith.constant 1 : index
    %c0_37 = arith.constant 0 : index
    %c0_38 = arith.constant 0 : index
    %64 = vector.load %arg9[%c1_36, %c0_37, %c0_38] : memref<2x4x256xbf16, #tpu.memory_space<vmem>>, vector<1x4x256xbf16>
    %65 = vector.shape_cast %64 : vector<1x4x256xbf16> to vector<4x256xbf16>
    %66 = vector.shape_cast %63 : vector<4x256xbf16> to vector<1x4x256xbf16>
    tpu.vector_store %arg9[%c1_36, %c0_37, %c0_38], %66 {strides = array<i32>} : memref<2x4x256xbf16, #tpu.memory_space<vmem>>, vector<1x4x256xbf16>,
    return
  }
  func.func @transform_0(%arg0: i32, %arg1: i32) -> (i32, i32, i32) {
    %c0_i32 = arith.constant 0 : i32
    %c0_i32_0 = arith.constant 0 : i32
    return %arg0, %c0_i32, %arg1 : i32, i32, i32
  }
  func.func @transform_1(%arg0: i32, %arg1: i32) -> (i32, i32, i32) {
    %c0_i32 = arith.constant 0 : i32
    %c0_i32_0 = arith.constant 0 : i32
    return %arg0, %c0_i32, %arg1 : i32, i32, i32
  }
  func.func @transform_2(%arg0: i32, %arg1: i32) -> (i32, i32) {
    %c0_i32 = arith.constant 0 : i32
    %c0_i32_0 = arith.constant 0 : i32
    %c0_i32_1 = arith.constant 0 : i32
    return %c0_i32, %c0_i32_0 : i32, i32
  }
  func.func @transform_3(%arg0: i32, %arg1: i32) -> (i32, i32) {
    %c0_i32 = arith.constant 0 : i32
    %c0_i32_0 = arith.constant 0 : i32
    %c0_i32_1 = arith.constant 0 : i32
    return %c0_i32, %c0_i32_0 : i32, i32
  }
  func.func @transform_4(%arg0: i32, %arg1: i32) -> (i32, i32) {
    %c0_i32 = arith.constant 0 : i32
    %c0_i32_0 = arith.constant 0 : i32
    %c0_i32_1 = arith.constant 0 : i32
    return %c0_i32, %c0_i32_0 : i32, i32
  }
  func.func @transform_5(%arg0: i32, %arg1: i32) -> (i32, i32) {
    %c0_i32 = arith.constant 0 : i32
    %c0_i32_0 = arith.constant 0 : i32
    %c0_i32_1 = arith.constant 0 : i32
    return %c0_i32, %c0_i32_0 : i32, i32
  }
  func.func @transform_6(%arg0: i32, %arg1: i32) -> (i32, i32) {
    %c0_i32 = arith.constant 0 : i32
    %c0_i32_0 = arith.constant 0 : i32
    %c0_i32_1 = arith.constant 0 : i32
    return %c0_i32, %c0_i32_0 : i32, i32
  }
  func.func @transform_7(%arg0: i32, %arg1: i32) -> (i32, i32, i32) {
    %c0_i32 = arith.constant 0 : i32
    %c0_i32_0 = arith.constant 0 : i32
    return %arg0, %c0_i32, %arg1 : i32, i32, i32
  }
}

</mosaic_0001>

<bundles_post_ra>
// kernel: attention_gate.1
= control target key start
LH: loop header
LB: loop body
LE: loop exit
PB: predicated region body
PF: predicated region fallthrough
CT: control target
= control target key end

     0   :  { %v394_v1 = vmov 0   ;;  %vm44_vm0 = vcmask 1041408   ;;  %vm40_vm1 = vcmask 31744   ;;  %vm190_vm9 = vcmask 1043456   ;;  %s532_s1 = inlined_call_operand.vmem [shape: bf16[2,4,256], index: 1, kind: input, shape index: {}]   ;;  %s533_s4 = inlined_call_operand.vmem [shape: f32[8,1], index: 4, kind: input, shape index: {}]   ;;  %s534_s6 = inlined_call_operand.<no memory space> [shape: f32[1,1], index: 6, kind: input, shape index: {}]   ;;  %s535_s0 = inlined_call_operand.vmem [shape: bf16[2,4,256], index: 0, kind: input, shape index: {}]   ;;  %s536_s5 = inlined_call_operand.vmem [shape: f32[8,1], index: 5, kind: input, shape index: {}]   ;;  %s537_s3 = inlined_call_operand.vmem [shape: bf16[8,4], index: 3, kind: input, shape index: {}]   ;;  %s538_s2 = inlined_call_operand.vmem [shape: bf16[8,4], index: 2, kind: input, shape index: {}]   ;;  %s539_s7 = inlined_call_operand.vmem [shape: bf16[2,4,256], index: 7, kind: output, shape index: {}]  }
   0x1   :  { %v438_v0 = vld [vmem:[%s532_s1] sm:$0xf]  ;;  %376 = vset.pattern.permute.xlu0 %v394_v1  ;;  %377 = vset.pattern.permute.xlu1 %v394_v1  ;;  %v12_v2 = vstv %s534_s6 }
   0x2   :  { %37 = vst [vmem:[#allocation1] ss:$4 sm:$0xff] %v438_v0  ;;  %v31_v3 = vld [vmem:[%s533_s4] sm:$0xff] }
   0x3   :  { %13 = vst [vmem:[#allocation2] sm:$0x1] %v12_v2  ;;  %114 = vperm.xlu0 %376, %v31_v3   ;;  %v34_v4 = vld [vmem:[%s535_s0] sm:$0xf] }
   0x4   :  { %v32_v5 = vld [vmem:[%s536_s5] sm:$0xff] }
   0x5   :  { %v458_v11 = vld [vmem:[%s537_s3] sm:$0xf] }
   0x6   :  { %v469_v16 = vld [vmem:[%s538_s2] sm:$0xf] }
   0x9   :  { %v39_v6 = vld.sshfl [vmem:[#allocation1 + $0x8] sm:$0xff pattern:$0x73625140]  ;;  %v38_v7 = vld.sshfl [vmem:[#allocation1] sm:$0xff pattern:$0x73625140] }
   0xa   :  { %v47_v8 = vsel %vm44_vm0, %v39_v6, 0  ;;  %v45_v9 = vsel %vm44_vm0, %v38_v7, 0  ;;  %76 = vst [vmem:[#allocation1] ss:$4 sm:$0xff] %v34_v4  ;;  %v33_v10 = vld [vmem:[#allocation2] sm:$0x1] }
   0xb   :  { %69 = vmatpush.bf16.msra.mxu1 %v47_v8  ;;  %56 = vmatpush.bf16.msra.mxu0 %v45_v9 }
   0xc   :  { %123 = vperm.xlu0 %376, %v32_v5   ;;  %142 = vperm.xlu1 %377, %v33_v10  }
   0xe   :  { %365 = vmatmul.msk.bf16.vlgmr.msra.gmra.mxu1 %vm40_vm1, %v458_v11  ;;  %364 = vmatmul.msk.bf16.vlgmr.msra.gmra.mxu0 %vm40_vm1, %v458_v11 }
  0x11   :  { %v77_v12 = vld.sshfl [vmem:[#allocation1] sm:$0xff pattern:$0x73625140]  ;;  %v78_v13 = vld.sshfl [vmem:[#allocation1 + $0x8] sm:$0xff pattern:$0x73625140] }
  0x12   :  { %v82_v14 = vsel %vm44_vm0, %v77_v12, 0  ;;  %v84_v15 = vsel %vm44_vm0, %v78_v13, 0 }
  0x13   :  { %93 = vmatpush.bf16.msra.mxu2 %v82_v14  ;;  %106 = vmatpush.bf16.msra.mxu3 %v84_v15 }
  0x16   :  { %366 = vmatmul.msk.bf16.vlgmr.msra.gmra.mxu2 %vm40_vm1, %v469_v16  ;;  %367 = vmatmul.msk.bf16.vlgmr.msra.gmra.mxu3 %vm40_vm1, %v469_v16 }
  0x75   :  { %v475_v21 = vpop.permute.xlu0 %114 }
  0x7e   :  { %v479_v30 = vpop.permute.xlu0 %123  ;;  %v143_v41 = vpop.permute.xlu1 %142 }
  0x7f   :  { %v483_v46 = vperm.slane %v143_v41, 0 }
  0x8b   :  { %v71_v17 = vpop.f32.mrf.mxu1  ;;  %v58_v18 = vpop.f32.mrf.mxu0 }
  0x93   :  { %v73_v19 = vpop.f32.mrf.mxu1  ;;  %v60_v20 = vpop.f32.mrf.mxu0 }
  0x99   :  { %v95_v22 = vpop.f32.mrf.mxu2  ;;  %v108_v23 = vpop.f32.mrf.mxu3 }
  0x9a   :  { %v96_v24 = vadd.f32 %v95_v22, %v58_v18  ;;  %v109_v25 = vadd.f32 %v108_v23, %v71_v17  ;;  %v186_v18 = vunpack.c.l.bf16 %v438_v0 }
  0x9c   :  { %v117_v26 = vadd.f32 %v475_v21, %v96_v24  ;;  %v118_v27 = vadd.f32 %v475_v21, %v109_v25  ;;  %v498_v24 = vld [vmem:[%s532_s1 + $0x4] sm:$0xf] }
  0x9e   :  { %v119_v28 = vmax.f32 %v117_v26, 0.0  ;;  %v120_v29 = vmax.f32 %v118_v27, 0.0 }
  0xa0   :  { %v126_v31 = vmul.f32 %v479_v30, %v119_v28  ;;  %v127_v32 = vmul.f32 %v479_v30, %v120_v29  ;;  %v368_v29 = vld [vmem:[%s535_s0 + $0x4] sm:$0xf] }
  0xa1   :  { %v97_v33 = vpop.f32.mrf.mxu2  ;;  %v110_v34 = vpop.f32.mrf.mxu3 }
  0xa2   :  { %v128_v35 = vrot.slane %v126_v31, 4  ;;  %v134_v36 = vrot.slane %v127_v32, 4 }
  0xa4   :  { %v129_v37 = vadd.f32 %v128_v35, %v126_v31  ;;  %v135_v38 = vadd.f32 %v134_v36, %v127_v32 }
  0xa6   :  { %v130_v39 = vrot.slane %v129_v37, 2  ;;  %v136_v40 = vrot.slane %v135_v38, 2 }
  0xa8   :  { %v131_v42 = vadd.f32 %v130_v39, %v129_v37  ;;  %v137_v43 = vadd.f32 %v136_v40, %v135_v38 }
  0xaa   :  { %v132_v44 = vrot.slane %v131_v42, 1  ;;  %v138_v45 = vrot.slane %v137_v43, 1 }
  0xac   :  { %v133_v47 = vadd.f32 %v132_v44, %v131_v42  ;;  %v139_v48 = vadd.f32 %v138_v45, %v137_v43 }
  0xae   :  { %v146_v49 = vadd.f32 %v483_v46, %v133_v47  ;;  %v147_v50 = vadd.f32 %v483_v46, %v139_v48 }
  0xb0   :  { %v148_v51 = vsub.f32 0.0, %v146_v49  ;;  %v149_v52 = vsub.f32 0.0, %v147_v50 }
  0xb2   :  { %v150_v53 = vmul.f32 1.442695, %v148_v51  ;;  %v152_v54 = vmul.f32 1.442695, %v149_v52 }
  0xb4   :  { %378 = vpow2.f32 %v150_v53 }
  0xb5   :  { %380 = vpow2.f32 %v152_v54 }
  0xba   :  { %v379_v55 = vpop.eup %378 }
  0xbb   :  { %v381_v56 = vpop.eup %380  ;;  %v154_v57 = vadd.f32 1.0, %v379_v55 }
  0xbc   :  { %v155_v58 = vadd.f32 1.0, %v381_v56 }
  0xbd   :  { %382 = vrcp.f32 %v154_v57  ;;  %vm161_vm4 = vweird.f32 %v154_v57  ;;  %v167_v7 = vand.u32 2147483648, %v154_v57  ;;  %v165_v9 = vand.u32 2147483647, %v154_v57 }
  0xbe   :  { %384 = vrcp.f32 %v155_v58  ;;  %v182_v3 = vand.u32 2147483648, %v155_v58  ;;  %v180_v5 = vand.u32 2147483647, %v155_v58  ;;  %vm176_vm6 = vweird.f32 %v155_v58 }
  0xbf   :  { %v168_v15 = vor.u32 1.1754944e-38, %v167_v7  ;;  %vm166_vm10 = vcmp.eq.f32.partialorder %v165_v9, 8.507059e+37 }
  0xc0   :  { %v183_v12 = vor.u32 1.1754944e-38, %v182_v3  ;;  %vm181_vm8 = vcmp.eq.f32.partialorder %v180_v5, 8.507059e+37 }
  0xc3   :  { %v383_v59 = vpop.eup %382 }
  0xc4   :  { %v385_v60 = vpop.eup %384  ;;  %v157_v61 = vmul.f32 %v383_v59, %v154_v57  ;;  %vm162_vm2 = vweird.f32 %v383_v59 }
  0xc5   :  { %v172_v62 = vmul.f32 %v385_v60, %v155_v58  ;;  %vm177_vm3 = vweird.f32 %v385_v60  ;;  %vm487_vm5 = vmor %vm161_vm4, %vm162_vm2 }
  0xc6   :  { %v158_v63 = vsub.f32 1.0, %v157_v61  ;;  %vm178_vm7 = vmor %vm176_vm6, %vm177_vm3 }
  0xc7   :  { %v173_v1 = vsub.f32 1.0, %v172_v62 }
  0xc8   :  { %v159_v2 = vmul.f32 %v383_v59, %v158_v63 }
  0xc9   :  { %v174_v4 = vmul.f32 %v385_v60, %v173_v1 }
  0xca   :  { %v160_v6 = vadd.f32 %v383_v59, %v159_v2 }
  0xcb   :  { %v175_v10 = vadd.f32 %v385_v60, %v174_v4 }
  0xcc   :  { %v164_v13 = vsel %vm487_vm5, %v383_v59, %v160_v6 }
  0xcd   :  { %v179_v14 = vsel %vm178_vm7, %v385_v60, %v175_v10  ;;  %v169_v20 = vsel %vm166_vm10, %v168_v15, %v164_v13 }
  0xce   :  { %v184_v17 = vsel %vm181_vm8, %v183_v12, %v179_v14 }
  0xcf   :  { %v189_v19 = vrot.slane %v184_v17, 4 }
  0xd1   :  { %v191_v22 = vsel %vm190_vm9, %v169_v20, %v189_v19 }
  0xd2   :  { %v193_v23 = vmul.f32 %v191_v22, %v186_v18 }
  0xd4   :  { %195 = vst [vmem:[#allocation1] ss:$2 sm:$0xff] %v193_v23 }
  0xdb   :  { %v196_v25 = vld.sshfl [vmem:[#allocation1] sm:$0xff pattern:$0x75316420]  ;;  %v197_v26 = vld.sshfl [vmem:[#allocation1 + $0x8] sm:$0xff pattern:$0x75316420] }
  0xdc   :  { %v200_v27 = vpack.c.bf16 %v197_v26, %v196_v25  ;;  %213 = vst [vmem:[#allocation1] ss:$4 sm:$0xff] %v498_v24 }
  0xde   :  { %v202_v28 = vrot.slane %v200_v27, 2 }
  0xe0   :  { %v205_v0 = vsel %vm44_vm0, %v200_v27, %v202_v28 }
  0xe1   :  { %207 = vst [vmem:[%s539_s7] sm:$0xf] %v205_v0 }
  0xe3   :  { %v214_v31 = vld.sshfl [vmem:[#allocation1] sm:$0xff pattern:$0x73625140]  ;;  %v215_v32 = vld.sshfl [vmem:[#allocation1 + $0x8] sm:$0xff pattern:$0x73625140] }
  0xe4   :  { %v216_v33 = vsel %vm44_vm0, %v214_v31, 0  ;;  %v218_v34 = vsel %vm44_vm0, %v215_v32, 0  ;;  %247 = vst [vmem:[#allocation1] ss:$4 sm:$0xff] %v368_v29 }
  0xe5   :  { %227 = vmatpush.bf16.msrb.mxu0 %v216_v33  ;;  %240 = vmatpush.bf16.msrb.mxu1 %v218_v34  ;;  %v338_v33 = vunpack.c.l.bf16 %v498_v24 }
  0xe8   :  { %370 = vmatmul.msk.bf16.vlgmr.msrb.gmra.mxu0 %vm40_vm1, %v458_v11  ;;  %371 = vmatmul.msk.bf16.vlgmr.msrb.gmra.mxu1 %vm40_vm1, %v458_v11 }
  0xeb   :  { %v248_v35 = vld.sshfl [vmem:[#allocation1] sm:$0xff pattern:$0x73625140]  ;;  %v249_v36 = vld.sshfl [vmem:[#allocation1 + $0x8] sm:$0xff pattern:$0x73625140] }
  0xec   :  { %v250_v37 = vsel %vm44_vm0, %v248_v35, 0  ;;  %v252_v38 = vsel %vm44_vm0, %v249_v36, 0 }
  0xed   :  { %261 = vmatpush.bf16.msrb.mxu2 %v250_v37  ;;  %274 = vmatpush.bf16.msrb.mxu3 %v252_v38 }
  0xf0   :  { %372 = vmatmul.msk.bf16.vlgmr.msrb.gmra.mxu2 %vm40_vm1, %v469_v16  ;;  %373 = vmatmul.msk.bf16.vlgmr.msrb.gmra.mxu3 %vm40_vm1, %v469_v16 }
 0x165   :  { %v229_v39 = vpop.f32.mrf.mxu0  ;;  %v242_v40 = vpop.f32.mrf.mxu1 }
 0x16d   :  { %v244_v41 = vpop.f32.mrf.mxu1  ;;  %v231_v42 = vpop.f32.mrf.mxu0 }
 0x173   :  { %v263_v43 = vpop.f32.mrf.mxu2  ;;  %v276_v11 = vpop.f32.mrf.mxu3 }
 0x174   :  { %v264_v44 = vadd.f32 %v263_v43, %v229_v39  ;;  %v277_v45 = vadd.f32 %v276_v11, %v242_v40 }
 0x176   :  { %v280_v47 = vadd.f32 %v264_v44, %v475_v21  ;;  %v281_v48 = vadd.f32 %v277_v45, %v475_v21 }
 0x178   :  { %v282_v49 = vmax.f32 %v280_v47, 0.0  ;;  %v283_v50 = vmax.f32 %v281_v48, 0.0 }
 0x17a   :  { %v284_v51 = vmul.f32 %v282_v49, %v479_v30  ;;  %v285_v52 = vmul.f32 %v283_v50, %v479_v30 }
 0x17b   :  { %v278_v53 = vpop.f32.mrf.mxu3  ;;  %v265_v16 = vpop.f32.mrf.mxu2 }
 0x17c   :  { %v286_v54 = vrot.slane %v284_v51, 4  ;;  %v292_v55 = vrot.slane %v285_v52, 4 }
 0x17e   :  { %v287_v56 = vadd.f32 %v286_v54, %v284_v51  ;;  %v293_v57 = vadd.f32 %v292_v55, %v285_v52 }
 0x180   :  { %v288_v58 = vrot.slane %v287_v56, 2  ;;  %v294_v59 = vrot.slane %v293_v57, 2 }
 0x182   :  { %v289_v60 = vadd.f32 %v288_v58, %v287_v56  ;;  %v295_v61 = vadd.f32 %v294_v59, %v293_v57 }
 0x184   :  { %v290_v62 = vrot.slane %v289_v60, 1  ;;  %v296_v63 = vrot.slane %v295_v61, 1 }
 0x186   :  { %v291_v1 = vadd.f32 %v290_v62, %v289_v60  ;;  %v297_v21 = vadd.f32 %v296_v63, %v295_v61 }
 0x188   :  { %v298_v2 = vadd.f32 %v291_v1, %v483_v46  ;;  %v299_v3 = vadd.f32 %v297_v21, %v483_v46 }
 0x18a   :  { %v300_v4 = vsub.f32 0.0, %v298_v2  ;;  %v301_v30 = vsub.f32 0.0, %v299_v3 }
 0x18c   :  { %v302_v5 = vmul.f32 1.442695, %v300_v4  ;;  %v304_v6 = vmul.f32 1.442695, %v301_v30 }
 0x18e   :  { %386 = vpow2.f32 %v302_v5 }
 0x18f   :  { %388 = vpow2.f32 %v304_v6 }
 0x194   :  { %v387_v7 = vpop.eup %386 }
 0x195   :  { %v389_v8 = vpop.eup %388  ;;  %v306_v9 = vadd.f32 1.0, %v387_v7 }
 0x196   :  { %v307_v10 = vadd.f32 1.0, %v389_v8 }
 0x197   :  { %390 = vrcp.f32 %v306_v9  ;;  %vm313_vm13 = vweird.f32 %v306_v9  ;;  %v319_v25 = vand.u32 2147483648, %v306_v9  ;;  %v317_v26 = vand.u32 2147483647, %v306_v9 }
 0x198   :  { %392 = vrcp.f32 %v307_v10  ;;  %v334_v46 = vand.u32 2147483648, %v307_v10  ;;  %v332_v22 = vand.u32 2147483647, %v307_v10  ;;  %vm328_vm15 = vweird.f32 %v307_v10 }
 0x199   :  { %v320_v31 = vor.u32 1.1754944e-38, %v319_v25  ;;  %vm318_vm3 = vcmp.eq.f32.partialorder %v317_v26, 8.507059e+37 }
 0x19a   :  { %v335_v28 = vor.u32 1.1754944e-38, %v334_v46  ;;  %vm333_vm2 = vcmp.eq.f32.partialorder %v332_v22, 8.507059e+37 }
 0x19d   :  { %v391_v12 = vpop.eup %390 }
 0x19e   :  { %v393_v13 = vpop.eup %392  ;;  %v309_v14 = vmul.f32 %v391_v12, %v306_v9  ;;  %vm314_vm11 = vweird.f32 %v391_v12 }
 0x19f   :  { %v324_v15 = vmul.f32 %v393_v13, %v307_v10  ;;  %vm329_vm12 = vweird.f32 %v393_v13  ;;  %vm315_vm14 = vmor %vm313_vm13, %vm314_vm11 }
 0x1a0   :  { %v310_v17 = vsub.f32 1.0, %v309_v14  ;;  %vm330_vm1 = vmor %vm328_vm15, %vm329_vm12 }
 0x1a1   :  { %v325_v18 = vsub.f32 1.0, %v324_v15 }
 0x1a2   :  { %v311_v19 = vmul.f32 %v391_v12, %v310_v17 }
 0x1a3   :  { %v326_v20 = vmul.f32 %v393_v13, %v325_v18 }
 0x1a4   :  { %v312_v23 = vadd.f32 %v391_v12, %v311_v19 }
 0x1a5   :  { %v327_v27 = vadd.f32 %v393_v13, %v326_v20 }
 0x1a6   :  { %v316_v0 = vsel %vm315_vm14, %v391_v12, %v312_v23 }
 0x1a7   :  { %v331_v29 = vsel %vm330_vm1, %v393_v13, %v327_v27  ;;  %v321_v35 = vsel %vm318_vm3, %v320_v31, %v316_v0 }
 0x1a8   :  { %v336_v32 = vsel %vm333_vm2, %v335_v28, %v331_v29 }
 0x1a9   :  { %v341_v34 = vrot.slane %v336_v32, 4 }
 0x1ab   :  { %v342_v36 = vsel %vm190_vm9, %v321_v35, %v341_v34 }
 0x1ac   :  { %v344_v37 = vmul.f32 %v342_v36, %v338_v33 }
 0x1ae   :  { %346 = vst [vmem:[#allocation1] ss:$2 sm:$0xff] %v344_v37 }
 0x1b5   :  { %v347_v38 = vld.sshfl [vmem:[#allocation1] sm:$0xff pattern:$0x75316420]  ;;  %v348_v39 = vld.sshfl [vmem:[#allocation1 + $0x8] sm:$0xff pattern:$0x75316420] }
 0x1b6   :  { %v351_v40 = vpack.c.bf16 %v348_v39, %v347_v38 }
 0x1b8   :  { %v353_v41 = vrot.slane %v351_v40, 2 }
 0x1ba   :  { %v356_v42 = vsel %vm44_vm0, %v351_v40, %v353_v41 }
 0x1bb   :  { %374 = vst [vmem:[%s539_s7 + $0x4] sm:$0xf] %v356_v42 }

</bundles_post_ra>
